<compile_context>
chip_gen: v6e
topology: v6e:2x2x1
jax: 0.10.0
libtpu: 0.0.40
codegen_flags: <defaults>
</compile_context>

<pallas_src>
import jax
import jax.numpy as jnp
from jax.experimental import pallas as pl
from jax.experimental.pallas import tpu as pltpu

IGNORE_VALUE = -1.0
LANES = 128
MAX_BLOCK_ROWS = 2048  # 2048 x 128 x 4B = 1 MiB per f32 input block


def _bce_ignore_kernel(n_ref, pred_ref, true_ref, out_ref, acc_sum, acc_cnt):
    """Streaming masked BCE-with-logits reduction.

    n_ref      : SMEM (1,) int32  -- number of real (unpadded) elements
    pred_ref   : VMEM (block_rows, 128) logits (native dtype)
    true_ref   : VMEM (block_rows, 128) targets (native dtype)
    out_ref    : VMEM (2, 128)   row 0 = per-lane loss sums, row 1 = per-lane counts
    acc_sum    : VMEM (1, 128) f32 scratch (persists across grid steps)
    acc_cnt    : VMEM (1, 128) f32 scratch (persists across grid steps)
    """
    i = pl.program_id(0)
    block_rows, lanes = pred_ref.shape

    @pl.when(i == 0)
    def _():
        acc_sum[...] = jnp.zeros_like(acc_sum)
        acc_cnt[...] = jnp.zeros_like(acc_cnt)

    # Cast in-kernel so bf16/f16 inputs stream at their native (narrow) width.
    x = pred_ref[...].astype(jnp.float32)
    y = true_ref[...].astype(jnp.float32)

    # Flat global index of every element in this block -> tail mask (covers both
    # the partial last grid block and the <128 lane pad, so pad values never matter).
    row = jax.lax.broadcasted_iota(jnp.int32, (block_rows, lanes), 0)
    lane = jax.lax.broadcasted_iota(jnp.int32, (block_rows, lanes), 1)
    flat_idx = i * (block_rows * lanes) + row * lanes + lane
    valid = (flat_idx < n_ref[0]) & (y != jnp.float32(IGNORE_VALUE))

    # BCEWithLogitsLoss (reduction='none'), numerically stable form:
    #   loss = max(x, 0) - x*y + log(1 + exp(-|x|))
    loss = jnp.maximum(x, 0.0) - x * y + jnp.log1p(jnp.exp(-jnp.abs(x)))
    loss = jnp.where(valid, loss, 0.0)

    # Only a sublane (axis 0) reduction per step; cross-lane reduce happens once
    # at the very end (in the wrapper).
    acc_sum[...] += jnp.sum(loss, axis=0, keepdims=True)
    acc_cnt[...] += jnp.sum(valid.astype(jnp.float32), axis=0, keepdims=True)

    @pl.when(i == pl.num_programs(0) - 1)
    def _():
        out_ref[0:1, :] = acc_sum[...]
        out_ref[1:2, :] = acc_cnt[...]


def cross_entropy_loss(y_pred, y_true):
    """Binary BCE-with-logits loss with ignore_value filtering, mean reduction.

    y_pred, y_true: arbitrary (matching) shapes, e.g. NCHW (B, C, H, W).
    Returns a scalar float32 loss.
    Matches PyTorch: if every element is ignored the result is NaN
    (torch.mean over an empty tensor).
    """
    pred_flat = y_pred.reshape(-1)
    true_flat = y_true.reshape(-1)
    n = pred_flat.shape[0]

    # Only pad up to a multiple of 128 lanes when strictly necessary (no-op for
    # most image shapes). Padded positions are masked in-kernel via `n`, so the
    # pad values are irrelevant.
    rem = n % LANES
    if rem:
        pad = LANES - rem
        pred_flat = jnp.pad(pred_flat, (0, pad))
        true_flat = jnp.pad(true_flat, (0, pad))

    rows = pred_flat.shape[0] // LANES
    pred2d = pred_flat.reshape(rows, LANES)   # metadata-only reshape (contiguous)
    true2d = true_flat.reshape(rows, LANES)

    # Largest block that is either a multiple of 8 sublanes or the full extent.
    block_rows = MAX_BLOCK_ROWS if rows >= MAX_BLOCK_ROWS else rows
    grid = (pl.cdiv(rows, block_rows),)

    n_arr = jnp.array([n], dtype=jnp.int32)

    partials = pl.pallas_call(
        _bce_ignore_kernel,
        out_shape=jax.ShapeDtypeStruct((2, LANES), jnp.float32),
        grid_spec=pltpu.PrefetchScalarGridSpec(
            num_scalar_prefetch=1,
            grid=grid,
            in_specs=[
                pl.BlockSpec((block_rows, LANES), lambda i, n: (i, 0)),
                pl.BlockSpec((block_rows, LANES), lambda i, n: (i, 0)),
            ],
            out_specs=pl.BlockSpec((2, LANES), lambda i, n: (0, 0)),
            scratch_shapes=[
                pltpu.VMEM((1, LANES), jnp.float32),
                pltpu.VMEM((1, LANES), jnp.float32),
            ],
        ),
        compiler_params=pltpu.CompilerParams(
            dimension_semantics=("arbitrary",),
        ),
    )(n_arr, pred2d, true2d)

    # TODO(synk): on v7x the single 'arbitrary' reduction axis runs on one
    # TensorCore; a 2-way 'parallel' leading axis with per-core partial rows
    # could be added if one TC cannot saturate HBM bandwidth.
    loss_sum = jnp.sum(partials[0])
    valid_cnt = jnp.sum(partials[1])
    return (loss_sum / valid_cnt).astype(jnp.float32)


def _reference_loss(y_pred, y_true):
    x = y_pred.reshape(-1).astype(jnp.float32)
    y = y_true.reshape(-1).astype(jnp.float32)
    valid = y != IGNORE_VALUE
    loss = jnp.maximum(x, 0.0) - x * y + jnp.log1p(jnp.exp(-jnp.abs(x)))
    return jnp.sum(jnp.where(valid, loss, 0.0)) / jnp.sum(valid.astype(jnp.float32))


def _make_case(key, shape, ignore_frac=0.1):
    k1, k2, k3 = jax.random.split(key, 3)
    y_pred = jax.random.normal(k1, shape, dtype=jnp.float32)
    y_true = jax.random.bernoulli(k2, 0.5, shape).astype(jnp.float32)
    ignore_mask = jax.random.bernoulli(k3, ignore_frac, shape)
    y_true = jnp.where(ignore_mask, jnp.float32(IGNORE_VALUE), y_true)
    return y_pred, y_true


if __name__ == "__main__":
    key = jax.random.PRNGKey(0)
    k_small, k_odd, k_big = jax.random.split(key, 3)

    # Primary case: NCHW, binary mode -> per-pixel logits.
    y_pred, y_true = _make_case(k_small, (2, 4, 16, 16))
    loss = cross_entropy_loss(y_pred, y_true)
    jax.block_until_ready(loss)
    ref = _reference_loss(y_pred, y_true)
    assert jnp.allclose(loss, ref, atol=1e-5, rtol=1e-5), (loss, ref)

    # Odd size (numel % 128 != 0) -> exercises the lane-pad + in-kernel masking.
    y_pred, y_true = _make_case(k_odd, (2, 3, 17, 19))
    loss = cross_entropy_loss(y_pred, y_true)
    jax.block_until_ready(loss)
    ref = _reference_loss(y_pred, y_true)
    assert jnp.allclose(loss, ref, atol=1e-5, rtol=1e-5), (loss, ref)

    # Medium size -> exercises multiple grid steps and a partial last block.
    y_pred, y_true = _make_case(k_big, (2, 1, 512, 513))
    loss = cross_entropy_loss(y_pred, y_true)
    jax.block_until_ready(loss)
    ref = _reference_loss(y_pred, y_true)
    assert jnp.allclose(loss, ref, atol=1e-5, rtol=1e-5), (loss, ref)

    print("KERNEL_OK")
</pallas_src>

<mosaic_0001>
module attributes {stable_mosaic.version = 11 : i64} {
  func.func @_bce_ignore_kernel(%arg0: i32, %arg1: memref<1xi32, #tpu.memory_space<smem>>, %arg2: memref<16x128xf32, #tpu.memory_space<vmem>>, %arg3: memref<16x128xf32, #tpu.memory_space<vmem>>, %arg4: memref<2x128xf32, #tpu.memory_space<vmem>>, %arg5: memref<1x128xf32, #tpu.memory_space<vmem>>, %arg6: memref<1x128xf32, #tpu.memory_space<vmem>>) attributes {dimension_semantics = [#tpu.dimension_semantics<arbitrary>], iteration_bounds = array<i64: 1>, scalar_prefetch = 1 : i64, scratch_operands = 2 : i64, tpu.core_type = #tpu.core_type<tc>, window_params = [{transform_indices = @transform_0, window_bounds = array<i64: 16, 128>}, {transform_indices = @transform_1, window_bounds = array<i64: 16, 128>}, {pipeline_mode = #tpu.pipeline_mode<synchronous>, transform_indices = @transform_2, window_bounds = array<i64: 2, 128>}]} {
    %c0_i32 = arith.constant 0 : i32
    %0 = arith.cmpi eq, %arg0, %c0_i32 : i32
    %1 = arith.extui %0 : i1 to i32
    %c0_i32_0 = arith.constant 0 : i32
    %2 = arith.cmpi ne, %1, %c0_i32_0 : i32
    scf.if %2 {
      %cst_20 = arith.constant 0.000000e+00 : f32
      %46 = vector.broadcast %cst_20 : f32 to vector<1x128xf32>
      %c0_21 = arith.constant 0 : index
      %c0_22 = arith.constant 0 : index
      %47 = vector.load %arg5[%c0_21, %c0_22] : memref<1x128xf32, #tpu.memory_space<vmem>>, vector<1x128xf32>
      tpu.vector_store %arg5[%c0_21, %c0_22], %46 {strides = array<i32>} : memref<1x128xf32, #tpu.memory_space<vmem>>, vector<1x128xf32>,
      %cst_23 = arith.constant 0.000000e+00 : f32
      %48 = vector.broadcast %cst_23 : f32 to vector<1x128xf32>
      %c0_24 = arith.constant 0 : index
      %c0_25 = arith.constant 0 : index
      %49 = vector.load %arg6[%c0_24, %c0_25] : memref<1x128xf32, #tpu.memory_space<vmem>>, vector<1x128xf32>
      tpu.vector_store %arg6[%c0_24, %c0_25], %48 {strides = array<i32>} : memref<1x128xf32, #tpu.memory_space<vmem>>, vector<1x128xf32>,
    } else {
    }
    %c0 = arith.constant 0 : index
    %c0_1 = arith.constant 0 : index
    %3 = vector.load %arg2[%c0, %c0_1] : memref<16x128xf32, #tpu.memory_space<vmem>>, vector<16x128xf32>
    %c0_2 = arith.constant 0 : index
    %c0_3 = arith.constant 0 : index
    %4 = vector.load %arg3[%c0_2, %c0_3] : memref<16x128xf32, #tpu.memory_space<vmem>>, vector<16x128xf32>
    %5 = tpu.iota {dimensions = array<i32: 0>} : vector<16x128xi32>
    %6 = tpu.iota {dimensions = array<i32: 1>} : vector<16x128xi32>
    %c2048_i32 = arith.constant 2048 : i32
    %7 = arith.muli %arg0, %c2048_i32 : i32
    %c128_i32 = arith.constant 128 : i32
    %8 = vector.broadcast %c128_i32 : i32 to vector<16x128xi32>
    %9 = arith.muli %5, %8 : vector<16x128xi32>
    %10 = vector.broadcast %7 : i32 to vector<16x128xi32>
    %11 = arith.addi %10, %9 : vector<16x128xi32>
    %12 = arith.addi %11, %6 : vector<16x128xi32>
    %c0_4 = arith.constant 0 : index
    %13 = memref.load %arg1[%c0_4] : memref<1xi32, #tpu.memory_space<smem>>
    %14 = vector.broadcast %13 : i32 to vector<16x128xi32>
    %15 = arith.cmpi slt, %12, %14 : vector<16x128xi32>
    %cst = arith.constant -1.000000e+00 : f32
    %16 = vector.broadcast %cst : f32 to vector<16x128xf32>
    %17 = arith.cmpf one, %4, %16 : vector<16x128xf32>
    %18 = arith.andi %15, %17 : vector<16x128xi1>
    %cst_5 = arith.constant 0.000000e+00 : f32
    %19 = vector.broadcast %cst_5 : f32 to vector<16x128xf32>
    %20 = arith.maximumf %3, %19 : vector<16x128xf32>
    %21 = arith.mulf %3, %4 : vector<16x128xf32>
    %22 = arith.subf %20, %21 : vector<16x128xf32>
    %23 = math.absf %3 : vector<16x128xf32>
    %cst_6 = arith.constant 0.000000e+00 : f32
    %24 = vector.broadcast %cst_6 : f32 to vector<16x128xf32>
    %25 = arith.subf %24, %23 : vector<16x128xf32>
    %26 = math.exp %25 : vector<16x128xf32>
    %27 = math.log1p %26 : vector<16x128xf32>
    %28 = arith.addf %22, %27 : vector<16x128xf32>
    %cst_7 = arith.constant 0.000000e+00 : f32
    %29 = vector.broadcast %cst_7 : f32 to vector<16x128xf32>
    %30 = arith.select %18, %28, %29 : vector<16x128xi1>, vector<16x128xf32>
    %c0_8 = arith.constant 0 : index
    %c0_9 = arith.constant 0 : index
    %31 = vector.load %arg5[%c0_8, %c0_9] : memref<1x128xf32, #tpu.memory_space<vmem>>, vector<1x128xf32>
    %cst_10 = arith.constant dense<0.000000e+00> : vector<128xf32>
    %32 = vector.multi_reduction <add>, %30, %cst_10 [0] : vector<16x128xf32> to vector<128xf32>
    %33 = vector.shape_cast %32 : vector<128xf32> to vector<1x128xf32>
    %34 = arith.addf %31, %33 : vector<1x128xf32>
    %c0_11 = arith.constant 0 : index
    %c0_12 = arith.constant 0 : index
    %35 = vector.load %arg5[%c0_11, %c0_12] : memref<1x128xf32, #tpu.memory_space<vmem>>, vector<1x128xf32>
    tpu.vector_store %arg5[%c0_11, %c0_12], %34 {strides = array<i32>} : memref<1x128xf32, #tpu.memory_space<vmem>>, vector<1x128xf32>,
    %c0_13 = arith.constant 0 : index
    %c0_14 = arith.constant 0 : index
    %36 = vector.load %arg6[%c0_13, %c0_14] : memref<1x128xf32, #tpu.memory_space<vmem>>, vector<1x128xf32>
    %37 = arith.extui %18 : vector<16x128xi1> to vector<16x128xi32>
    %38 = arith.sitofp %37 : vector<16x128xi32> to vector<16x128xf32>
    %cst_15 = arith.constant dense<0.000000e+00> : vector<128xf32>
    %39 = vector.multi_reduction <add>, %38, %cst_15 [0] : vector<16x128xf32> to vector<128xf32>
    %40 = vector.shape_cast %39 : vector<128xf32> to vector<1x128xf32>
    %41 = arith.addf %36, %40 : vector<1x128xf32>
    %c0_16 = arith.constant 0 : index
    %c0_17 = arith.constant 0 : index
    %42 = vector.load %arg6[%c0_16, %c0_17] : memref<1x128xf32, #tpu.memory_space<vmem>>, vector<1x128xf32>
    tpu.vector_store %arg6[%c0_16, %c0_17], %41 {strides = array<i32>} : memref<1x128xf32, #tpu.memory_space<vmem>>, vector<1x128xf32>,
    %c0_i32_18 = arith.constant 0 : i32
    %43 = arith.cmpi eq, %arg0, %c0_i32_18 : i32
    %44 = arith.extui %43 : i1 to i32
    %c0_i32_19 = arith.constant 0 : i32
    %45 = arith.cmpi ne, %44, %c0_i32_19 : i32
    scf.if %45 {
      %c0_20 = arith.constant 0 : index
      %c0_21 = arith.constant 0 : index
      %46 = vector.load %arg5[%c0_20, %c0_21] : memref<1x128xf32, #tpu.memory_space<vmem>>, vector<1x128xf32>
      %c0_22 = arith.constant 0 : index
      %c0_23 = arith.constant 0 : index
      %47 = vector.load %arg4[%c0_22, %c0_23] : memref<2x128xf32, #tpu.memory_space<vmem>>, vector<1x128xf32>
      tpu.vector_store %arg4[%c0_22, %c0_23], %46 {strides = array<i32>} : memref<2x128xf32, #tpu.memory_space<vmem>>, vector<1x128xf32>,
      %c0_24 = arith.constant 0 : index
      %c0_25 = arith.constant 0 : index
      %48 = vector.load %arg6[%c0_24, %c0_25] : memref<1x128xf32, #tpu.memory_space<vmem>>, vector<1x128xf32>
      %c1 = arith.constant 1 : index
      %c0_26 = arith.constant 0 : index
      %49 = vector.load %arg4[%c1, %c0_26] : memref<2x128xf32, #tpu.memory_space<vmem>>, vector<1x128xf32>
      tpu.vector_store %arg4[%c1, %c0_26], %48 {strides = array<i32>} : memref<2x128xf32, #tpu.memory_space<vmem>>, vector<1x128xf32>,
    } else {
    }
    return
  }
  func.func @transform_0(%arg0: i32, %arg1: memref<1xi32, #tpu.memory_space<smem>>) -> (i32, i32) {
    %c0_i32 = arith.constant 0 : i32
    %c0_i32_0 = arith.constant 0 : i32
    return %arg0, %c0_i32 : i32, i32
  }
  func.func @transform_1(%arg0: i32, %arg1: memref<1xi32, #tpu.memory_space<smem>>) -> (i32, i32) {
    %c0_i32 = arith.constant 0 : i32
    %c0_i32_0 = arith.constant 0 : i32
    return %arg0, %c0_i32 : i32, i32
  }
  func.func @transform_2(%arg0: i32, %arg1: memref<1xi32, #tpu.memory_space<smem>>) -> (i32, i32) {
    %c0_i32 = arith.constant 0 : i32
    %c0_i32_0 = arith.constant 0 : i32
    %c0_i32_1 = arith.constant 0 : i32
    return %c0_i32, %c0_i32_0 : i32, i32
  }
}

</mosaic_0001>

<bundles_post_ra>
// kernel: tpu_custom_call.1
= control target key start
LH: loop header
LB: loop body
LE: loop exit
PB: predicated region body
PF: predicated region fallthrough
CT: control target
= control target key end

     0   :  { %9 = vsyncpa [#allocation7], 0  ;;  %s292_s0 = inlined_call_operand.<no memory space> [shape: s32[1], index: 0, kind: input, shape index: {}]   ;;  %s293_s1 = inlined_call_operand.hbm [shape: f32[16,128], index: 1, kind: input, shape index: {}]   ;;  %s294_s2 = inlined_call_operand.hbm [shape: f32[16,128], index: 2, kind: input, shape index: {}]   ;;  %s295_s3 = inlined_call_operand.hbm [shape: f32[2,128], index: 3, kind: output, shape index: {}]  }
   0x1   :  { %10 = vsyncpa [#allocation10], 0 }
   0x2   :  { %11 = vsyncpa [#allocation8], 0  ;;  %s238_s12 = smov [#allocation6]  }
   0x3   :  { %s17_s13 = sshll.u32 %s238_s12, 4  ;;  %s18_s13 = int_to_ptr.vmem [resolvable:$true] %s17_s13 }
   0x4   :  { %s180_s14 = scalar_lea.vmem %s18_s13, 256  ;;  %p185_p1 = scmp.lt.s32.totalorder %s18_s13, %s18_s13 }
   0x5   :  { %p181_p0 = scmp.ne.s32.totalorder %s18_s13, %s180_s14  ;;  %p186_p2 = scmp.lt.s32.totalorder %s180_s14, %s180_s14 }
   0x7   :  { %p187_p3 = por %p186_p2, %p185_p1 }
   0x9   :  { %p188_p4 = pnand %p187_p3, %p181_p0 }
   0xb   :  { %191 = shalt.err (!%p188_p4)
}
   0xc   :  { %s239_s15 = smov 128   ;;  %s240_s16 = smov 8  }
   0xd   :  { %23 = dma.hbm_to_vmem [thread:$0]  %s293_s1, 256, %s18_s13, [#allocation7], %s239_s15, %s239_s15, %s240_s16  }
   0xe   :  { %s241_s19 = smov [#allocation9]  }
   0xf   :  { %s29_s20 = sshll.u32 %s241_s19, 4  ;;  %s30_s20 = int_to_ptr.vmem [resolvable:$true] %s29_s20 }
  0x10   :  { %s200_s21 = scalar_lea.vmem %s30_s20, 256  ;;  %p205_p6 = scmp.lt.s32.totalorder %s30_s20, %s30_s20 }
  0x11   :  { %p201_p5 = scmp.ne.s32.totalorder %s30_s20, %s200_s21  ;;  %p206_p7 = scmp.lt.s32.totalorder %s200_s21, %s200_s21 }
  0x13   :  { %p207_p8 = por %p206_p7, %p205_p6 }
  0x15   :  { %p208_p9 = pnand %p207_p8, %p201_p5 }
  0x17   :  { %211 = shalt.err (!%p208_p9)
}
  0x18   :  { %35 = dma.hbm_to_vmem [thread:$0]  %s294_s2, 256, %s30_s20, [#allocation10], %s239_s15, %s239_s15, %s240_s16  }
  0x19   :  { %232 = dma.done.wait [#allocation7], 256  }
  0x1a   :  { %233 = vsyncadd [#allocation7], 4294967040 }
  0x1b   :  { %234 = dma.done.wait [#allocation10], 256  }
  0x1c   :  { %235 = vsyncadd [#allocation10], 4294967040  ;;  %v52_v0 = vlaneseq  ;;  %v242_v1 = vmov 0.0   ;;  %v66_v6 = vstv %s292_s0  ;;  %v48_v9 = vld [vmem:[#allocation6] sm:$0xff]  ;;  %v49_v10 = vld [vmem:[#allocation6 + $0x8] sm:$0xff]  ;;  %s243_s0 = smov [#allocation11]  }
  0x1d   :  { %46 = vst [vmem:[#allocation2] sm:$0x1] %v242_v1  ;;  %47 = vst [vmem:[#allocation3] sm:$0x1] %v242_v1  ;;  %v50_v11 = vld [vmem:[#allocation9] sm:$0xff]  ;;  %v51_v12 = vld [vmem:[#allocation9 + $0x8] sm:$0xff] }
  0x1e   :  { %v53_v2 = vshrl.u32 %v52_v0, 7  ;;  %v56_v3 = vand.u32 127, %v52_v0  ;;  %vm69_vm1 = vcmp.ne.f32.partialorder %v50_v11, -1.0  ;;  %vm70_vm2 = vcmp.ne.f32.partialorder %v51_v12, -1.0  ;;  %s146_s2 = sshll.u32 %s243_s0, 4  ;;  %s147_s2 = int_to_ptr.vmem [resolvable:$true] %s146_s2 }
  0x1f   :  { %v79_v15 = vand.u32 2147483647, %v48_v9  ;;  %v80_v16 = vand.u32 2147483647, %v49_v10  ;;  %v73_v41 = vmax.f32 %v48_v9, 0.0  ;;  %v75_v42 = vmul.f32 %v50_v11, %v48_v9  ;;  %s212_s25 = scalar_lea.vmem %s147_s2, 32  ;;  %p217_p11 = scmp.lt.s32.totalorder %s147_s2, %s147_s2 }
  0x20   :  { %v54_v4 = vadd.s32 8, %v53_v2  ;;  %v58_v5 = vmul.u32 128, %v53_v2  ;;  %v74_v45 = vmax.f32 %v49_v10, 0.0  ;;  %v76_v46 = vmul.f32 %v51_v12, %v49_v10  ;;  %p213_p10 = scmp.ne.s32.totalorder %s147_s2, %s212_s25  ;;  %p218_p12 = scmp.lt.s32.totalorder %s212_s25, %s212_s25 }
  0x21   :  { %v81_v19 = vsub.f32 0.0, %v79_v15  ;;  %v82_v20 = vsub.f32 0.0, %v80_v16  ;;  %v77_v50 = vsub.f32 %v73_v41, %v75_v42 }
  0x22   :  { %v59_v7 = vmul.u32 128, %v54_v4  ;;  %v63_v8 = vadd.s32 %v58_v5, %v56_v3  ;;  %v78_v53 = vsub.f32 %v74_v45, %v76_v46  ;;  %p219_p13 = por %p218_p12, %p217_p11 }
  0x23   :  { %v83_v23 = vmul.f32 1.442695, %v81_v19  ;;  %v85_v24 = vmul.f32 1.442695, %v82_v20 }
  0x24   :  { %v64_v13 = vadd.s32 %v59_v7, %v56_v3  ;;  %vm67_vm0 = vcmp.lt.s32.totalorder %v63_v8, %v66_v6  ;;  %v119_v30 = vld [vmem:[#allocation3] sm:$0x1]  ;;  %v109_v4 = vld [vmem:[#allocation2] sm:$0x1]  ;;  %p220_p0 = pnand %p219_p13, %p213_p10 }
  0x25   :  { %vm273_vm3 = vmand %vm67_vm0, %vm69_vm1  ;;  %164 = vpow2.f32 %v83_v23 }
  0x26   :  { %vm68_vm4 = vcmp.lt.s32.totalorder %v64_v13, %v66_v6  ;;  %v156_v17 = vsel %vm273_vm3, 1.0, %v242_v1  ;;  %166 = vpow2.f32 %v85_v24 }
  0x27   :  { %vm279_vm5 = vmand %vm68_vm4, %vm70_vm2 }
  0x28   :  { %v157_v21 = vsel %vm279_vm5, 1.0, %v242_v1 }
  0x29   :  { %v124_v22 = vadd.f32 %v157_v21, %v156_v17 }
  0x2b   :  { %v125_v25 = vrot.slane %v124_v22, 4 }
  0x2d   :  { %v126_v26 = vadd.f32 %v125_v25, %v124_v22 }
  0x2f   :  { %v127_v27 = vrot.slane %v126_v26, 2 }
  0x31   :  { %v128_v28 = vadd.f32 %v127_v27, %v126_v26 }
  0x32   :  { %v165_v33 = vpop.eup %164 }
  0x33   :  { %v129_v29 = vrot.slane %v128_v28, 1  ;;  %v167_v34 = vpop.eup %166  ;;  %v87_v35 = vadd.f32 1.0, %v165_v33  ;;  %v90_v37 = vmul.f32 -0.5, %v165_v33  ;;  %v93_v43 = vand.u32 2147483647, %v165_v33 }
  0x34   :  { %v96_v36 = vadd.f32 1.0, %v167_v34  ;;  %v99_v39 = vmul.f32 -0.5, %v167_v34  ;;  %v102_v47 = vand.u32 2147483647, %v167_v34 }
  0x35   :  { %v130_v31 = vadd.f32 %v129_v29, %v128_v28  ;;  %168 = vlog2.f32 %v87_v35  ;;  %v91_v40 = vadd.f32 1.0, %v90_v37  ;;  %vm94_vm6 = vcmp.lt.f32.partialorder %v93_v43, 0.0004427343 }
  0x36   :  { %170 = vlog2.f32 %v96_v36  ;;  %v100_v44 = vadd.f32 1.0, %v99_v39  ;;  %vm103_vm7 = vcmp.lt.f32.partialorder %v102_v47, 0.0004427343 }
  0x37   :  { %v131_v32 = vadd.f32 %v130_v31, %v119_v30  ;;  %v92_v48 = vmul.f32 %v165_v33, %v91_v40 }
  0x38   :  { %v101_v51 = vmul.f32 %v167_v34, %v100_v44 }
  0x39   :  { %132 = vst [vmem:[#allocation3] sm:$0x1] %v131_v32 }
  0x40   :  { %v138_v38 = vld [vmem:[#allocation3] sm:$0x1] }
  0x41   :  { %139 = vst [vmem:[#allocation11 + $0x1] sm:$0x1] %v138_v38 }
  0x42   :  { %v169_v49 = vpop.eup %168 }
  0x43   :  { %v171_v52 = vpop.eup %170  ;;  %v89_v54 = vmul.f32 0.6931472, %v169_v49 }
  0x44   :  { %v98_v55 = vmul.f32 0.6931472, %v171_v52 }
  0x45   :  { %v95_v56 = vsel %vm94_vm6, %v92_v48, %v89_v54 }
  0x46   :  { %v104_v57 = vsel %vm103_vm7, %v101_v51, %v98_v55  ;;  %v105_v58 = vadd.f32 %v95_v56, %v77_v50 }
  0x47   :  { %v106_v59 = vadd.f32 %v104_v57, %v78_v53 }
  0x48   :  { %v107_v60 = vsel %vm273_vm3, %v105_v58, 0.0 }
  0x49   :  { %v108_v61 = vsel %vm279_vm5, %v106_v59, 0.0 }
  0x4a   :  { %v110_v62 = vadd.f32 %v108_v61, %v107_v60 }
  0x4c   :  { %v111_v63 = vrot.slane %v110_v62, 4 }
  0x4e   :  { %v112_v0 = vadd.f32 %v111_v63, %v110_v62 }
  0x50   :  { %v113_v1 = vrot.slane %v112_v0, 2 }
  0x52   :  { %v114_v2 = vadd.f32 %v113_v1, %v112_v0 }
  0x54   :  { %v115_v3 = vrot.slane %v114_v2, 1 }
  0x56   :  { %v116_v5 = vadd.f32 %v115_v3, %v114_v2 }
  0x58   :  { %v117_v6 = vadd.f32 %v116_v5, %v109_v4 }
  0x5a   :  { %118 = vst [vmem:[#allocation2] sm:$0x1] %v117_v6 }
  0x61   :  { %v136_v7 = vld [vmem:[#allocation2] sm:$0x1] }
  0x62   :  { %137 = vst [vmem:[#allocation11] sm:$0x1] %v136_v7 }
  0x63   :  { %223 = shalt.err (!%p220_p0)
}
  0x64   :  { %149 = dma.vmem_to_hbm [thread:$0]  %s147_s2, 32, %s295_s3, [#allocation8]  }
  0x65   :  { %236 = dma.done.wait [#allocation8], 32  }
  0x66   :  { %237 = vsyncadd [#allocation8], 4294967264 }
  0x67   :  { %153 = vsyncpa [#allocation7], 1 }
  0x68   :  { %154 = vsyncpa [#allocation10], 1 }
  0x69   :  { %155 = vsyncpa [#allocation8], 1 }

</bundles_post_ra>
